<compile_context>
chip_gen: v6e
topology: v6e:2x2x1
jax: 0.10.0
libtpu: 0.0.40
codegen_flags: <defaults>
</compile_context>

<pallas_src>
import jax
import jax.numpy as jnp
from jax import lax
from jax.experimental import pallas as pl
from jax.experimental.pallas import tpu as pltpu


def _round_up(x, m):
    return (x + m - 1) // m * m


def afm_kernel(idx_ref, table_ref, p_ref, out_ref):
    # idx_ref:   (F, Bt)  int32 feature indices, batch on lanes
    # table_ref: (K, NF)  fp32 transposed embedding table (resident across the grid)
    # p_ref:     (K, 1)   fp32 projection vector
    # out_ref:   (1, Bt)  fp32 sigmoid logits, lane-dense
    F, Bt = idx_ref.shape
    K, NF = table_ref.shape

    table = table_ref[...]                                         # (K, NF)
    feat_iota = lax.broadcasted_iota(jnp.int32, (NF, Bt), 0)       # (NF, Bt) row ids

    # Single-pass accumulation over fields: only one gathered (K, Bt) tile live at a time.
    s = jnp.zeros((K, Bt), jnp.float32)
    sq = jnp.zeros((K, Bt), jnp.float32)
    for f in range(F):                                             # F is small & static
        idx_row = idx_ref[pl.ds(f, 1), :]                          # (1, Bt) int32
        onehot = (feat_iota == idx_row).astype(jnp.float32)        # (NF, Bt)
        # Fused gather: table_T @ one_hot picks the embedding column per lane (MXU is
        # otherwise idle here, so this is free; exact — products are x*1 or x*0).
        e = jnp.dot(table, onehot, preferred_element_type=jnp.float32)  # (K, Bt)
        s = s + e
        sq = sq + e * e

    fm = s * s - sq                                                # (K, Bt) FM aggregator

    # Attention branch of the reference:
    #   atts = softmax(relu(fm @ W + b) @ h, dim=1), shape (B, 1).
    # softmax over a size-1 dim is exactly 1.0, so atts * fm == fm bit-exactly and the
    # whole MLP is dead code in the forward pass -> elided (no extra MXU/EUP work).
    outs = jnp.sum(fm * p_ref[...], axis=0, keepdims=True)         # (1, Bt) == (atts*fm) @ p
    out_ref[...] = 1.0 / (1.0 + jnp.exp(-outs))                    # sigmoid


def afm_forward(all_feature_index, emb_table, W, b, h, p, *, btile=8192):
    """all_feature_index: (B, F) int32; emb_table: (NF, K) fp32 (max_norm already applied);
    W:(K,T), b:(1,T), h:(T,1) attention-MLP params (mathematically inert in the forward
    pass, see kernel comment); p: (K, 1)."""
    del W, b, h  # softmax over a size-1 dim == 1.0 exactly -> attention MLP cancels out.
    B, F = all_feature_index.shape
    NF, K = emb_table.shape
    # The fused one-hot gather contracts over NF on the MXU; only use this kernel while the
    # table is modest. TODO(synk): for large NF, switch to a manual DMA row-gather instead.
    assert NF <= 4096, "fused one-hot gather assumes a modest embedding table"

    # Batch tile: multiple of 128 lanes, capped so tiny demos don't over-pad.
    btile = max(128, (min(btile, _round_up(B, 128)) // 128) * 128)
    Bpad = _round_up(B, btile)

    # Only the tiny (F, B) index matrix is re-laid-out / padded (F*B*4 bytes), not the
    # full (B, F, K) embedding tensor — no extra HBM streaming pass before the kernel.
    idx_t = jnp.transpose(all_feature_index.astype(jnp.int32), (1, 0))   # (F, B)
    if Bpad != B:
        idx_t = jnp.pad(idx_t, ((0, 0), (0, Bpad - B)))                   # pad lanes w/ idx 0
    table_t = jnp.transpose(emb_table, (1, 0))                            # (K, NF), tiny

    out = pl.pallas_call(
        afm_kernel,
        out_shape=jax.ShapeDtypeStruct((1, Bpad), jnp.float32),
        grid=(Bpad // btile,),
        in_specs=[
            pl.BlockSpec((F, btile), lambda i: (0, i)),    # indices tiled on lanes (double-buffered)
            pl.BlockSpec((K, NF), lambda i: (0, 0)),       # embedding table resident in VMEM
            pl.BlockSpec((K, 1), lambda i: (0, 0)),        # p resident
        ],
        out_specs=pl.BlockSpec((1, btile), lambda i: (0, i)),  # lane-dense output stores
        compiler_params=pltpu.CompilerParams(
            dimension_semantics=("parallel",),             # independent B tiles (v7x: 2 TCs)
            vmem_limit_bytes=48 * 1024 * 1024),            # fits v7x 64 MiB/TC; plenty on v5e/v6e
    )(idx_t, table_t, p)
    return out[0, :B]                                      # torch.squeeze -> (B,)


def afm_reference(feature_embs, W, b, h, p):
    # Full reference including the (mathematically inert) attention MLP.
    s = jnp.sum(feature_embs, axis=1) ** 2
    sq = jnp.sum(feature_embs ** 2, axis=1)
    fm = s - sq
    a = jnp.maximum(fm @ W + b, 0.0)
    att = jax.nn.softmax(a @ h, axis=1)
    return jax.nn.sigmoid(jnp.squeeze((att * fm) @ p))


if __name__ == "__main__":
    key = jax.random.PRNGKey(0)
    k_emb, k_w, k_b, k_h, k_p, k_udf, k_idf, k_u, k_i = jax.random.split(key, 9)

    # Small, forward-consistent shapes.
    n_features = 64     # embedding table rows
    K = 16              # embedding dim (k)
    T = 8               # attention hidden dim (t)
    B = 8               # batch
    n_user_feats, n_item_feats = 2, 2
    F = n_user_feats + n_item_feats
    n_users, n_items = 10, 12

    # Deterministic parameter init (synthetic; no checkpoint load).
    emb_table = jax.random.normal(k_emb, (n_features, K), jnp.float32) * 0.5
    # nn.Embedding(max_norm=1): renormalize rows whose L2 norm exceeds 1.
    # (Equivalent to PyTorch's forward-time renorm for a single inference pass.)
    norms = jnp.linalg.norm(emb_table, axis=1, keepdims=True)
    emb_table = emb_table * jnp.minimum(1.0, 1.0 / jnp.maximum(norms, 1e-12))

    def xavier(key, shape):
        fan_in, fan_out = shape[0], shape[1]
        limit = (6.0 / (fan_in + fan_out)) ** 0.5
        return jax.random.uniform(key, shape, jnp.float32, -limit, limit)

    # attention_liner: PyTorch Linear(k, t) stored transposed as (K, T) so y = x @ W + b.
    W = xavier(k_w, (K, T))
    b = (jax.random.uniform(k_b, (1, T), jnp.float32) - 0.5) * (2.0 / K ** 0.5)
    h = xavier(k_h, (T, 1))
    p = xavier(k_p, (K, 1))

    # Synthetic user_df / item_df: per-id feature index tables.
    user_df = jax.random.randint(k_udf, (n_users, n_user_feats), 0, n_features // 2)
    item_df = jax.random.randint(k_idf, (n_items, n_item_feats), n_features // 2, n_features)

    # Batch of (u, i) id pairs.
    u = jax.random.randint(k_u, (B,), 0, n_users)
    i = jax.random.randint(k_i, (B,), 0, n_items)

    # __getAllFeatures (glue, plain JAX): (B, F) int feature indices.
    all_feature_index = jnp.concatenate([user_df[u], item_df[i]], axis=1)   # (B, F)

    # Kernel: embedding gather + FM + sigmoid fused, batch on lanes.
    logit = afm_forward(all_feature_index, emb_table, W, b, h, p)
    jax.block_until_ready(logit)

    # Reference: explicit gather + full attention path.
    feature_embs = emb_table[all_feature_index]                             # (B, F, K)
    ref = afm_reference(feature_embs, W, b, h, p)
    assert logit.shape == (B,)
    assert jnp.allclose(logit, ref, atol=1e-5, rtol=1e-5)
    print("KERNEL_OK")
</pallas_src>

<mosaic_0001>
module attributes {stable_mosaic.version = 11 : i64} {
  func.func @afm_kernel(%arg0: i32, %arg1: memref<4x128xi32, #tpu.memory_space<vmem>>, %arg2: memref<16x64xf32, #tpu.memory_space<vmem>>, %arg3: memref<16x1xf32, #tpu.memory_space<vmem>>, %arg4: memref<1x128xf32, #tpu.memory_space<vmem>>) attributes {dimension_semantics = [#tpu.dimension_semantics<parallel>], iteration_bounds = array<i64: 1>, scalar_prefetch = 0 : i64, scratch_operands = 0 : i64, tpu.core_type = #tpu.core_type<tc>, window_params = [{transform_indices = @transform_0, window_bounds = array<i64: 4, 128>}, {pipeline_mode = #tpu.pipeline_mode<synchronous>, transform_indices = @transform_1, window_bounds = array<i64: 16, 64>}, {pipeline_mode = #tpu.pipeline_mode<synchronous>, transform_indices = @transform_2, window_bounds = array<i64: 16, 1>}, {transform_indices = @transform_3, window_bounds = array<i64: 1, 128>}]} {
    %c0 = arith.constant 0 : index
    %c0_0 = arith.constant 0 : index
    %0 = vector.load %arg2[%c0, %c0_0] : memref<16x64xf32, #tpu.memory_space<vmem>>, vector<16x64xf32>
    %1 = tpu.iota {dimensions = array<i32: 0>} : vector<64x128xi32>
    %cst = arith.constant 0.000000e+00 : f32
    %2 = vector.broadcast %cst : f32 to vector<16x128xf32>
    %cst_1 = arith.constant 0.000000e+00 : f32
    %3 = vector.broadcast %cst_1 : f32 to vector<16x128xf32>
    %c0_2 = arith.constant 0 : index
    %c0_3 = arith.constant 0 : index
    %4 = vector.load %arg1[%c0_2, %c0_3] : memref<4x128xi32, #tpu.memory_space<vmem>>, vector<1x128xi32>
    %5 = vector.broadcast %4 : vector<1x128xi32> to vector<64x128xi32>
    %6 = arith.cmpi eq, %1, %5 : vector<64x128xi32>
    %7 = arith.extui %6 : vector<64x128xi1> to vector<64x128xi32>
    %8 = arith.sitofp %7 : vector<64x128xi32> to vector<64x128xf32>
    %cst_4 = arith.constant dense<0.000000e+00> : vector<16x128xf32>
    %9 = tpu.matmul %0, %8, %cst_4 {dimension_numbers = #tpu.dot_dimension_numbers<[1], [0], [0], [1], [0, 0, 1, 1], [], []>} : vector<16x64xf32>, vector<64x128xf32>, vector<16x128xf32> -> vector<16x128xf32>
    %10 = arith.addf %2, %9 : vector<16x128xf32>
    %11 = arith.mulf %9, %9 : vector<16x128xf32>
    %12 = arith.addf %3, %11 : vector<16x128xf32>
    %c1 = arith.constant 1 : index
    %c0_5 = arith.constant 0 : index
    %13 = vector.load %arg1[%c1, %c0_5] : memref<4x128xi32, #tpu.memory_space<vmem>>, vector<1x128xi32>
    %14 = vector.broadcast %13 : vector<1x128xi32> to vector<64x128xi32>
    %15 = arith.cmpi eq, %1, %14 : vector<64x128xi32>
    %16 = arith.extui %15 : vector<64x128xi1> to vector<64x128xi32>
    %17 = arith.sitofp %16 : vector<64x128xi32> to vector<64x128xf32>
    %cst_6 = arith.constant dense<0.000000e+00> : vector<16x128xf32>
    %18 = tpu.matmul %0, %17, %cst_6 {dimension_numbers = #tpu.dot_dimension_numbers<[1], [0], [0], [1], [0, 0, 1, 1], [], []>} : vector<16x64xf32>, vector<64x128xf32>, vector<16x128xf32> -> vector<16x128xf32>
    %19 = arith.addf %10, %18 : vector<16x128xf32>
    %20 = arith.mulf %18, %18 : vector<16x128xf32>
    %21 = arith.addf %12, %20 : vector<16x128xf32>
    %c2 = arith.constant 2 : index
    %c0_7 = arith.constant 0 : index
    %22 = vector.load %arg1[%c2, %c0_7] : memref<4x128xi32, #tpu.memory_space<vmem>>, vector<1x128xi32>
    %23 = vector.broadcast %22 : vector<1x128xi32> to vector<64x128xi32>
    %24 = arith.cmpi eq, %1, %23 : vector<64x128xi32>
    %25 = arith.extui %24 : vector<64x128xi1> to vector<64x128xi32>
    %26 = arith.sitofp %25 : vector<64x128xi32> to vector<64x128xf32>
    %cst_8 = arith.constant dense<0.000000e+00> : vector<16x128xf32>
    %27 = tpu.matmul %0, %26, %cst_8 {dimension_numbers = #tpu.dot_dimension_numbers<[1], [0], [0], [1], [0, 0, 1, 1], [], []>} : vector<16x64xf32>, vector<64x128xf32>, vector<16x128xf32> -> vector<16x128xf32>
    %28 = arith.addf %19, %27 : vector<16x128xf32>
    %29 = arith.mulf %27, %27 : vector<16x128xf32>
    %30 = arith.addf %21, %29 : vector<16x128xf32>
    %c3 = arith.constant 3 : index
    %c0_9 = arith.constant 0 : index
    %31 = vector.load %arg1[%c3, %c0_9] : memref<4x128xi32, #tpu.memory_space<vmem>>, vector<1x128xi32>
    %32 = vector.broadcast %31 : vector<1x128xi32> to vector<64x128xi32>
    %33 = arith.cmpi eq, %1, %32 : vector<64x128xi32>
    %34 = arith.extui %33 : vector<64x128xi1> to vector<64x128xi32>
    %35 = arith.sitofp %34 : vector<64x128xi32> to vector<64x128xf32>
    %cst_10 = arith.constant dense<0.000000e+00> : vector<16x128xf32>
    %36 = tpu.matmul %0, %35, %cst_10 {dimension_numbers = #tpu.dot_dimension_numbers<[1], [0], [0], [1], [0, 0, 1, 1], [], []>} : vector<16x64xf32>, vector<64x128xf32>, vector<16x128xf32> -> vector<16x128xf32>
    %37 = arith.addf %28, %36 : vector<16x128xf32>
    %38 = arith.mulf %36, %36 : vector<16x128xf32>
    %39 = arith.addf %30, %38 : vector<16x128xf32>
    %40 = arith.mulf %37, %37 : vector<16x128xf32>
    %41 = arith.subf %40, %39 : vector<16x128xf32>
    %c0_11 = arith.constant 0 : index
    %c0_12 = arith.constant 0 : index
    %42 = vector.load %arg3[%c0_11, %c0_12] : memref<16x1xf32, #tpu.memory_space<vmem>>, vector<16x1xf32>
    %43 = vector.broadcast %42 : vector<16x1xf32> to vector<16x128xf32>
    %44 = arith.mulf %41, %43 : vector<16x128xf32>
    %cst_13 = arith.constant dense<0.000000e+00> : vector<128xf32>
    %45 = vector.multi_reduction <add>, %44, %cst_13 [0] : vector<16x128xf32> to vector<128xf32>
    %46 = vector.shape_cast %45 : vector<128xf32> to vector<1x128xf32>
    %cst_14 = arith.constant 0.000000e+00 : f32
    %47 = vector.broadcast %cst_14 : f32 to vector<1x128xf32>
    %48 = arith.subf %47, %46 : vector<1x128xf32>
    %49 = math.exp %48 : vector<1x128xf32>
    %cst_15 = arith.constant 1.000000e+00 : f32
    %50 = vector.broadcast %cst_15 : f32 to vector<1x128xf32>
    %51 = arith.addf %50, %49 : vector<1x128xf32>
    %cst_16 = arith.constant 1.000000e+00 : f32
    %52 = vector.broadcast %cst_16 : f32 to vector<1x128xf32>
    %53 = arith.divf %52, %51 : vector<1x128xf32>
    %c0_17 = arith.constant 0 : index
    %c0_18 = arith.constant 0 : index
    %54 = vector.load %arg4[%c0_17, %c0_18] : memref<1x128xf32, #tpu.memory_space<vmem>>, vector<1x128xf32>
    tpu.vector_store %arg4[%c0_17, %c0_18], %53 {strides = array<i32>} : memref<1x128xf32, #tpu.memory_space<vmem>>, vector<1x128xf32>,
    return
  }
  func.func @transform_0(%arg0: i32) -> (i32, i32) {
    %c0_i32 = arith.constant 0 : i32
    %c0_i32_0 = arith.constant 0 : i32
    return %c0_i32, %arg0 : i32, i32
  }
  func.func @transform_1(%arg0: i32) -> (i32, i32) {
    %c0_i32 = arith.constant 0 : i32
    %c0_i32_0 = arith.constant 0 : i32
    %c0_i32_1 = arith.constant 0 : i32
    return %c0_i32, %c0_i32_0 : i32, i32
  }
  func.func @transform_2(%arg0: i32) -> (i32, i32) {
    %c0_i32 = arith.constant 0 : i32
    %c0_i32_0 = arith.constant 0 : i32
    %c0_i32_1 = arith.constant 0 : i32
    return %c0_i32, %c0_i32_0 : i32, i32
  }
  func.func @transform_3(%arg0: i32) -> (i32, i32) {
    %c0_i32 = arith.constant 0 : i32
    %c0_i32_0 = arith.constant 0 : i32
    return %c0_i32, %arg0 : i32, i32
  }
}

</mosaic_0001>

<bundles_post_ra>
// kernel: tpu_custom_call.1
= control target key start
LH: loop header
LB: loop body
LE: loop exit
PB: predicated region body
PF: predicated region fallthrough
CT: control target
= control target key end

     0   :  { %8 = vsyncpa [#allocation3], 0  ;;  %s952_s0 = inlined_call_operand.hbm [shape: s32[4,128], index: 0, kind: input, shape index: {}]   ;;  %s953_s1 = inlined_call_operand.vmem [shape: f32[16,64], index: 1, kind: input, shape index: {}]   ;;  %s954_s2 = inlined_call_operand.vmem [shape: f32[16,1], index: 2, kind: input, shape index: {}]   ;;  %s955_s3 = inlined_call_operand.hbm [shape: f32[1,128], index: 3, kind: output, shape index: {}]  }
   0x1   :  { %9 = vsyncpa [#allocation4], 0  ;;  %s777_s12 = smov [#allocation2]  }
   0x2   :  { %s16_s13 = sshll.u32 %s777_s12, 4  ;;  %s17_s13 = int_to_ptr.vmem [resolvable:$true] %s16_s13 }
   0x3   :  { %s741_s14 = scalar_lea.vmem %s17_s13, 64  ;;  %p746_p1 = scmp.lt.s32.totalorder %s17_s13, %s17_s13 }
   0x4   :  { %p742_p0 = scmp.ne.s32.totalorder %s17_s13, %s741_s14  ;;  %p747_p2 = scmp.lt.s32.totalorder %s741_s14, %s741_s14 }
   0x6   :  { %p748_p3 = por %p747_p2, %p746_p1 }
   0x8   :  { %p749_p4 = pnand %p748_p3, %p742_p0 }
   0xa   :  { %752 = shalt.err (!%p749_p4)
}
   0xb   :  { %19 = dma.hbm_to_vmem [thread:$0]  %s952_s0, 64, %s17_s13, [#allocation3]  }
   0xc   :  { %773 = dma.done.wait [#allocation3], 64  }
   0xd   :  { %774 = vsyncadd [#allocation3], 4294967232  ;;  %v29_v0 = vlaneseq  ;;  %v778_v1 = vmov 0   ;;  %vm67_vm0 = vcmask 523264   ;;  %v532_v6 = vld [vmem:[#allocation2] ss:$0 sm:$0xff] }
   0xe   :  { %728 = vset.pattern.permute.xlu0 %v778_v1  ;;  %v551_v7 = vld [vmem:[#allocation2 + $0x1] ss:$0 sm:$0xff]  ;;  %v779_v10 = vmov 1.0   ;;  %v570_v14 = vld [vmem:[#allocation2 + $0x2] ss:$0 sm:$0xff]  ;;  %v28_v16 = vld [vmem:[%s953_s1 + $0x8] sm:$0xff] }
   0xf   :  { %v804_v2 = vshrl.u32 %v29_v0, 7  ;;  %v821_v9 = vld [vmem:[%s953_s1] sm:$0xff]  ;;  %v490_v18 = vld [vmem:[%s954_s2 + $0x8] sm:$0xff] }
  0x10   :  { %664 = vmatprep.mubr.msk.f32.mxu0 %vm67_vm0, %v821_v9  ;;  %v589_v15 = vld [vmem:[#allocation2 + $0x3] ss:$0 sm:$0xff]  ;;  %683 = vmatprep.mubr.msk.f32.mxu1 %vm67_vm0, %v821_v9 }
  0x11   :  { %v807_v3 = vadd.s32 56, %v804_v2  ;;  %v810_v4 = vadd.s32 48, %v804_v2  ;;  %v813_v5 = vadd.s32 40, %v804_v2  ;;  %v816_v8 = vadd.s32 32, %v804_v2  ;;  %v489_v17 = vld [vmem:[%s954_s2] sm:$0xff]  ;;  %s780_s2 = smov [#allocation5]  }
  0x12   :  { %v836_v11 = vadd.s32 24, %v804_v2  ;;  %v845_v12 = vadd.s32 16, %v804_v2  ;;  %v854_v13 = vadd.s32 8, %v804_v2  ;;  %vm43_vm15 = vcmp.eq.s32.totalorder %v804_v2, %v532_v6  ;;  %493 = vperm.xlu0 %728, %v489_v17   ;;  %s523_s23 = sshll.u32 %s780_s2, 4  ;;  %s524_s23 = int_to_ptr.vmem [resolvable:$true] %s523_s23 }
  0x13   :  { %vm50_vm1 = vcmp.eq.s32.totalorder %v807_v3, %v532_v6  ;;  %vm167_vm2 = vcmp.eq.s32.totalorder %v807_v3, %v551_v7  ;;  %vm49_vm3 = vcmp.eq.s32.totalorder %v810_v4, %v532_v6  ;;  %vm166_vm4 = vcmp.eq.s32.totalorder %v810_v4, %v551_v7  ;;  %s753_s24 = scalar_lea.vmem %s524_s23, 16  ;;  %s757_s25 = scalar_lea.vmem %s524_s23, 32 }
  0x14   :  { %648 = vmatprep.subr.msk.mxu0 %vm50_vm1, %v779_v10  ;;  %667 = vmatprep.subr.msk.mxu1 %vm167_vm2, %v779_v10  ;;  %vm48_vm5 = vcmp.eq.s32.totalorder %v813_v5, %v532_v6  ;;  %vm165_vm6 = vcmp.eq.s32.totalorder %v813_v5, %v551_v7  ;;  %vm47_vm7 = vcmp.eq.s32.totalorder %v816_v8, %v532_v6  ;;  %p754_p5 = scmp.ne.s32.totalorder %s524_s23, %s753_s24  ;;  %p758_p6 = scmp.lt.s32.totalorder %s524_s23, %s524_s23 }
  0x15   :  { %649 = vmatpush3.msk.msra.mxu0 %vm50_vm1, %v779_v10  ;;  %668 = vmatpush3.msk.msra.mxu1 %vm167_vm2, %v779_v10  ;;  %vm164_vm8 = vcmp.eq.s32.totalorder %v816_v8, %v551_v7  ;;  %vm46_vm9 = vcmp.eq.s32.totalorder %v836_v11, %v532_v6  ;;  %vm163_vm10 = vcmp.eq.s32.totalorder %v836_v11, %v551_v7  ;;  %p759_p7 = scmp.lt.s32.totalorder %s757_s25, %s753_s24 }
  0x16   :  { %650 = vmatprep.subr.msk.mxu0 %vm49_vm3, %v779_v10  ;;  %669 = vmatprep.subr.msk.mxu1 %vm166_vm4, %v779_v10  ;;  %vm45_vm11 = vcmp.eq.s32.totalorder %v845_v12, %v532_v6  ;;  %vm162_vm12 = vcmp.eq.s32.totalorder %v845_v12, %v551_v7  ;;  %vm44_vm13 = vcmp.eq.s32.totalorder %v854_v13, %v532_v6 }
  0x17   :  { %651 = vmatpush3.msk.msra.mxu0 %vm49_vm3, %v779_v10  ;;  %670 = vmatpush3.msk.msra.mxu1 %vm166_vm4, %v779_v10  ;;  %vm161_vm14 = vcmp.eq.s32.totalorder %v854_v13, %v551_v7  ;;  %vm160_vm1 = vcmp.eq.s32.totalorder %v804_v2, %v551_v7  ;;  %vm277_vm2 = vcmp.eq.s32.totalorder %v807_v3, %v570_v14  ;;  %p760_p8 = por %p759_p7, %p758_p6 }
  0x18   :  { %652 = vmatprep.subr.msk.mxu0 %vm48_vm5, %v779_v10  ;;  %671 = vmatprep.subr.msk.mxu1 %vm165_vm6, %v779_v10  ;;  %vm387_vm3 = vcmp.eq.s32.totalorder %v807_v3, %v589_v15  ;;  %vm276_vm4 = vcmp.eq.s32.totalorder %v810_v4, %v570_v14 }
  0x19   :  { %653 = vmatpush3.msk.msra.mxu0 %vm48_vm5, %v779_v10  ;;  %672 = vmatpush3.msk.msra.mxu1 %vm165_vm6, %v779_v10  ;;  %vm386_vm5 = vcmp.eq.s32.totalorder %v810_v4, %v589_v15  ;;  %vm275_vm6 = vcmp.eq.s32.totalorder %v813_v5, %v570_v14  ;;  %p761_p9 = pnand %p760_p8, %p754_p5 }
  0x1a   :  { %654 = vmatprep.subr.msk.mxu0 %vm47_vm7, %v779_v10  ;;  %673 = vmatprep.subr.msk.mxu1 %vm164_vm8, %v779_v10 }
  0x1b   :  { %655 = vmatpush3.msk.msra.mxu0 %vm47_vm7, %v779_v10  ;;  %674 = vmatpush3.msk.msra.mxu1 %vm164_vm8, %v779_v10  ;;  %vm385_vm7 = vcmp.eq.s32.totalorder %v813_v5, %v589_v15  ;;  %vm274_vm8 = vcmp.eq.s32.totalorder %v816_v8, %v570_v14 }
  0x1c   :  { %656 = vmatprep.subr.msk.mxu0 %vm46_vm9, %v779_v10  ;;  %675 = vmatprep.subr.msk.mxu1 %vm163_vm10, %v779_v10 }
  0x1d   :  { %657 = vmatpush3.msk.msra.mxu0 %vm46_vm9, %v779_v10  ;;  %676 = vmatpush3.msk.msra.mxu1 %vm163_vm10, %v779_v10  ;;  %vm384_vm9 = vcmp.eq.s32.totalorder %v816_v8, %v589_v15  ;;  %vm273_vm10 = vcmp.eq.s32.totalorder %v836_v11, %v570_v14 }
  0x1e   :  { %658 = vmatprep.subr.msk.mxu0 %vm45_vm11, %v779_v10  ;;  %677 = vmatprep.subr.msk.mxu1 %vm162_vm12, %v779_v10 }
  0x1f   :  { %659 = vmatpush3.msk.msra.mxu0 %vm45_vm11, %v779_v10  ;;  %678 = vmatpush3.msk.msra.mxu1 %vm162_vm12, %v779_v10  ;;  %vm383_vm11 = vcmp.eq.s32.totalorder %v836_v11, %v589_v15  ;;  %vm272_vm12 = vcmp.eq.s32.totalorder %v845_v12, %v570_v14 }
  0x20   :  { %660 = vmatprep.subr.msk.mxu0 %vm44_vm13, %v779_v10  ;;  %679 = vmatprep.subr.msk.mxu1 %vm161_vm14, %v779_v10 }
  0x21   :  { %661 = vmatpush3.msk.msra.mxu0 %vm44_vm13, %v779_v10  ;;  %680 = vmatpush3.msk.msra.mxu1 %vm161_vm14, %v779_v10  ;;  %vm382_vm13 = vcmp.eq.s32.totalorder %v845_v12, %v589_v15  ;;  %vm271_vm14 = vcmp.eq.s32.totalorder %v854_v13, %v570_v14 }
  0x22   :  { %662 = vmatprep.subr.msk.mxu0 %vm43_vm15, %v779_v10  ;;  %681 = vmatprep.subr.msk.mxu1 %vm160_vm1, %v779_v10 }
  0x23   :  { %663 = vmatpush3.msk.msra.mxu0 %vm43_vm15, %v779_v10  ;;  %682 = vmatpush3.msk.msra.mxu1 %vm160_vm1, %v779_v10  ;;  %vm381_vm15 = vcmp.eq.s32.totalorder %v854_v13, %v589_v15  ;;  %vm270_vm1 = vcmp.eq.s32.totalorder %v804_v2, %v570_v14 }
  0x24   :  { %665 = vmatmul.mubr.msk.f32.vlgmr.msra.gmra.mxu0 %vm67_vm0, %v28_v16  ;;  %684 = vmatmul.mubr.msk.f32.vlgmr.msra.gmra.mxu1 %vm67_vm0, %v28_v16 }
  0x25   :  { %686 = vmatprep.subr.msk.mxu0 %vm277_vm2, %v779_v10  ;;  %705 = vmatprep.subr.msk.mxu1 %vm387_vm3, %v779_v10 }
  0x26   :  { %687 = vmatpush3.msk.msra.mxu0 %vm277_vm2, %v779_v10  ;;  %706 = vmatpush3.msk.msra.mxu1 %vm387_vm3, %v779_v10  ;;  %vm380_vm2 = vcmp.eq.s32.totalorder %v804_v2, %v589_v15 }
  0x27   :  { %688 = vmatprep.subr.msk.mxu0 %vm276_vm4, %v779_v10  ;;  %707 = vmatprep.subr.msk.mxu1 %vm386_vm5, %v779_v10 }
  0x28   :  { %689 = vmatpush3.msk.msra.mxu0 %vm276_vm4, %v779_v10  ;;  %708 = vmatpush3.msk.msra.mxu1 %vm386_vm5, %v779_v10 }
  0x29   :  { %690 = vmatprep.subr.msk.mxu0 %vm275_vm6, %v779_v10  ;;  %709 = vmatprep.subr.msk.mxu1 %vm385_vm7, %v779_v10 }
  0x2a   :  { %691 = vmatpush3.msk.msra.mxu0 %vm275_vm6, %v779_v10  ;;  %710 = vmatpush3.msk.msra.mxu1 %vm385_vm7, %v779_v10 }
  0x2b   :  { %692 = vmatprep.subr.msk.mxu0 %vm274_vm8, %v779_v10  ;;  %711 = vmatprep.subr.msk.mxu1 %vm384_vm9, %v779_v10 }
  0x2c   :  { %693 = vmatpush3.msk.msra.mxu0 %vm274_vm8, %v779_v10  ;;  %712 = vmatpush3.msk.msra.mxu1 %vm384_vm9, %v779_v10 }
  0x2d   :  { %694 = vmatprep.subr.msk.mxu0 %vm273_vm10, %v779_v10  ;;  %713 = vmatprep.subr.msk.mxu1 %vm383_vm11, %v779_v10 }
  0x2e   :  { %695 = vmatpush3.msk.msra.mxu0 %vm273_vm10, %v779_v10  ;;  %714 = vmatpush3.msk.msra.mxu1 %vm383_vm11, %v779_v10 }
  0x2f   :  { %696 = vmatprep.subr.msk.mxu0 %vm272_vm12, %v779_v10  ;;  %715 = vmatprep.subr.msk.mxu1 %vm382_vm13, %v779_v10 }
  0x30   :  { %697 = vmatpush3.msk.msra.mxu0 %vm272_vm12, %v779_v10  ;;  %716 = vmatpush3.msk.msra.mxu1 %vm382_vm13, %v779_v10 }
  0x31   :  { %698 = vmatprep.subr.msk.mxu0 %vm271_vm14, %v779_v10  ;;  %717 = vmatprep.subr.msk.mxu1 %vm381_vm15, %v779_v10 }
  0x32   :  { %699 = vmatpush3.msk.msra.mxu0 %vm271_vm14, %v779_v10  ;;  %718 = vmatpush3.msk.msra.mxu1 %vm381_vm15, %v779_v10 }
  0x33   :  { %700 = vmatprep.subr.msk.mxu0 %vm270_vm1, %v779_v10  ;;  %719 = vmatprep.subr.msk.mxu1 %vm380_vm2, %v779_v10 }
  0x34   :  { %701 = vmatpush3.msk.msra.mxu0 %vm270_vm1, %v779_v10  ;;  %702 = vmatprep.mubr.msk.f32.mxu0 %vm67_vm0, %v821_v9 }
  0x35   :  { %720 = vmatpush3.msk.msra.mxu1 %vm380_vm2, %v779_v10  ;;  %721 = vmatprep.mubr.msk.f32.mxu1 %vm67_vm0, %v821_v9 }
  0x36   :  { %703 = vmatmul.mubr.msk.f32.vlgmr.msra.gmra.mxu0 %vm67_vm0, %v28_v16  ;;  %722 = vmatmul.mubr.msk.f32.vlgmr.msra.gmra.mxu1 %vm67_vm0, %v28_v16 }
  0x37   :  { %498 = vperm.xlu0 %728, %v490_v18  }
  0x8d   :  { %v494_v42 = vpop.permute.xlu0 %493 }
  0xb2   :  { %v499_v52 = vpop.permute.xlu0 %498 }
  0xe4   :  { %v666_v19 = vpop.f32.mrf.mxu0  ;;  %v685_v20 = vpop.f32.mrf.mxu1 }
  0xe5   :  { %v152_v23 = vmul.f32 %v666_v19, %v666_v19  ;;  %v262_v24 = vmul.f32 %v685_v20, %v685_v20  ;;  %v260_v27 = vadd.f32 %v685_v20, %v666_v19 }
  0xe6   :  { %v140_v21 = vpop.f32.mrf.mxu0  ;;  %v250_v22 = vpop.f32.mrf.mxu1 }
  0xe7   :  { %v151_v25 = vmul.f32 %v140_v21, %v140_v21  ;;  %v261_v26 = vmul.f32 %v250_v22, %v250_v22  ;;  %v264_v29 = vadd.f32 %v262_v24, %v152_v23  ;;  %v259_v30 = vadd.f32 %v250_v22, %v140_v21 }
  0xe9   :  { %v263_v34 = vadd.f32 %v261_v26, %v151_v25 }
  0xf6   :  { %v704_v28 = vpop.f32.mrf.mxu0  ;;  %v723_v33 = vpop.f32.mrf.mxu1 }
  0xf7   :  { %v370_v31 = vadd.f32 %v704_v28, %v260_v27  ;;  %v372_v32 = vmul.f32 %v704_v28, %v704_v28  ;;  %v482_v35 = vmul.f32 %v723_v33, %v723_v33 }
  0xf8   :  { %v360_v36 = vpop.f32.mrf.mxu0  ;;  %v470_v41 = vpop.f32.mrf.mxu1 }
  0xf9   :  { %v374_v37 = vadd.f32 %v372_v32, %v264_v29  ;;  %v480_v38 = vadd.f32 %v723_v33, %v370_v31  ;;  %v369_v39 = vadd.f32 %v360_v36, %v259_v30  ;;  %v371_v40 = vmul.f32 %v360_v36, %v360_v36 }
  0xfa   :  { %v481_v43 = vmul.f32 %v470_v41, %v470_v41 }
  0xfb   :  { %v484_v44 = vadd.f32 %v482_v35, %v374_v37  ;;  %v486_v45 = vmul.f32 %v480_v38, %v480_v38  ;;  %v373_v46 = vadd.f32 %v371_v40, %v263_v34  ;;  %v479_v47 = vadd.f32 %v470_v41, %v369_v39 }
  0xfd   :  { %v483_v48 = vadd.f32 %v481_v43, %v373_v46  ;;  %v485_v49 = vmul.f32 %v479_v47, %v479_v47  ;;  %v488_v50 = vsub.f32 %v486_v45, %v484_v44 }
  0xff   :  { %v487_v51 = vsub.f32 %v485_v49, %v483_v48  ;;  %v502_v54 = vmul.f32 %v499_v52, %v488_v50 }
 0x101   :  { %v501_v53 = vmul.f32 %v494_v42, %v487_v51 }
 0x103   :  { %v503_v55 = vadd.f32 %v502_v54, %v501_v53 }
 0x105   :  { %v504_v56 = vrot.slane %v503_v55, 4 }
 0x107   :  { %v505_v57 = vadd.f32 %v504_v56, %v503_v55 }
 0x109   :  { %v506_v58 = vrot.slane %v505_v57, 2 }
 0x10b   :  { %v507_v59 = vadd.f32 %v506_v58, %v505_v57 }
 0x10d   :  { %v508_v60 = vrot.slane %v507_v59, 1 }
 0x10f   :  { %v509_v61 = vadd.f32 %v508_v60, %v507_v59 }
 0x111   :  { %v510_v62 = vsub.f32 0.0, %v509_v61 }
 0x113   :  { %v511_v63 = vmul.f32 1.442695, %v510_v62 }
 0x115   :  { %729 = vpow2.f32 %v511_v63 }
 0x122   :  { %v730_v0 = vpop.eup %729 }
 0x123   :  { %v513_v1 = vadd.f32 1.0, %v730_v0 }
 0x125   :  { %731 = vrcp.f32 %v513_v1 }
 0x132   :  { %v732_v2 = vpop.eup %731 }
 0x133   :  { %516 = vst [vmem:[#allocation5] sm:$0x1] %v732_v2 }
 0x134   :  { %764 = shalt.err (!%p761_p9)
}
 0x135   :  { %526 = dma.vmem_to_hbm [thread:$0]  %s524_s23, 16, %s955_s3, [#allocation4]  }
 0x136   :  { %775 = dma.done.wait [#allocation4], 16  }
 0x137   :  { %776 = vsyncadd [#allocation4], 4294967280 }
 0x138   :  { %530 = vsyncpa [#allocation3], 1 }
 0x139   :  { %531 = vsyncpa [#allocation4], 1 }

</bundles_post_ra>
